<compile_context>
chip_gen: v5e
topology: v5e:2x2
jax: 0.10.0
libtpu: 0.0.40
codegen_flags: <defaults>
</compile_context>

<pallas_src>
import functools

import jax
import jax.numpy as jnp
from jax.experimental import pallas as pl
from jax.experimental.pallas import tpu as pltpu

_LANE = 128


def _round_up(x, m):
    return (x + m - 1) // m * m


def _min_sublane(dtype):
    # Second-to-last block dim must be a multiple of 8 * (4 / itemsize):
    # f32 -> 8, bf16 -> 16, int8/bool -> 32.
    return max(8, 8 * (4 // jnp.dtype(dtype).itemsize))


def _default_num_cores():
    # 2 TensorCores per device on v7x (and megacore v4/v5p); 1 on v5e/v6e.
    try:
        kind = jax.devices()[0].device_kind.lower()
    except Exception:
        return 1
    if any(s in kind for s in ("v7", "7x", "v4", "v5p")):
        return 2
    return 1


def _bce_terms(x, t):
    """Per-element BCE(sigmoid(x), t) with nn.BCELoss' -100 log clamps."""
    x = x.astype(jnp.float32)
    t = t.astype(jnp.float32)
    # log(sigmoid(x)) = -softplus(-x); log(1 - sigmoid(x)) = -x - softplus(-x).
    sp = jnp.maximum(-x, 0.0) + jnp.log(1.0 + jnp.exp(-jnp.abs(x)))
    log_p = jnp.maximum(-sp, -100.0)
    log_1mp = jnp.maximum(-x - sp, -100.0)
    return -(t * log_p + (1.0 - t) * log_1mp)


def _bce_kernel(logits_ref, targets_ref, out_ref, *, block_rows, acc_rows,
                steps_per_core, rows_valid, need_mask):
    k = pl.program_id(1)

    @pl.when(k == 0)
    def _():
        out_ref[...] = jnp.zeros_like(out_ref)

    loss = _bce_terms(logits_ref[...], targets_ref[...])

    def _accumulate(vals):
        # Fold sublane groups into the resident (acc_rows, 128) partial-sum
        # block: acc_rows // 8 independent VPU add chains per step.
        out_ref[...] += vals.reshape(block_rows // acc_rows, acc_rows,
                                     _LANE).sum(axis=0)

    if not need_mask:
        _accumulate(loss)
    else:
        blk = pl.program_id(0) * steps_per_core + k      # logical block id
        full = (blk + 1) * block_rows <= rows_valid      # block fully valid?

        @pl.when(full)
        def _():
            _accumulate(loss)                            # unmasked fast path

        @pl.when(jnp.logical_not(full))
        def _():
            # Boundary / phantom block: row-level compare only (no flat index,
            # no int32 overflow).  Padded/garbage rows never survive the where.
            row = blk * block_rows + jax.lax.broadcasted_iota(
                jnp.int32, loss.shape, 0)
            _accumulate(jnp.where(row < rows_valid, loss, 0.0))


def bce_loss_2d(logits, targets, *, tile_rows=16384, num_cores=None):
    """Equivalent of BCELoss2d().forward(logits, targets) -> scalar mean.

    tile_rows: pipeline block height (rows of 128 lanes). Default 16384
      (8 MiB/f32 input block, ~34 MiB VMEM total). Keep <= 16384 on v7x
      (64 MiB physical VMEM).
    num_cores: leading parallel grid axis; auto-detected (2 only on
      multi-TensorCore chips).
    """
    assert logits.shape == targets.shape
    total = int(logits.size)
    n = jnp.float32(total)

    lf = logits.reshape(-1)
    tf = targets.reshape(-1)

    row_align = max(_min_sublane(logits.dtype), _min_sublane(targets.dtype))
    rows = total // _LANE

    if rows < row_align:
        # Tiny tensor: kernel-launch overhead dominates; compute directly.
        return jnp.sum(_bce_terms(lf, tf)) / n

    rem = total - rows * _LANE
    tail_sum = jnp.float32(0.0)
    if rem:
        # Lane-ragged tail (< 128 elements): tiny plain-JAX epilogue instead
        # of a full-tensor pad copy of both inputs.
        tail_sum = jnp.sum(_bce_terms(lf[rows * _LANE:], tf[rows * _LANE:]))
        lf = lf[: rows * _LANE]
        tf = tf[: rows * _LANE]

    lf = lf.reshape(rows, _LANE)
    tf = tf.reshape(rows, _LANE)

    if num_cores is None:
        num_cores = _default_num_cores()

    tile_rows = _round_up(max(int(tile_rows), 64), 64)
    block_rows = min(tile_rows, (rows // row_align) * row_align)  # <= rows
    acc_rows = 64 if block_rows % 64 == 0 else 8

    num_blocks = pl.cdiv(rows, block_rows)
    num_cores = max(1, min(int(num_cores), num_blocks))
    steps_per_core = pl.cdiv(num_blocks, num_cores)
    has_phantom = num_cores * steps_per_core != num_blocks
    need_mask = has_phantom or (num_blocks * block_rows != rows)
    max_block = num_blocks - 1

    if has_phantom:
        # Phantom trailing steps re-read the last valid block; their
        # contribution is masked to zero inside the kernel.
        def in_map(c, k):
            return (jnp.minimum(c * steps_per_core + k, max_block), 0)
    else:
        def in_map(c, k):
            return (c * steps_per_core + k, 0)

    kernel = functools.partial(
        _bce_kernel, block_rows=block_rows, acc_rows=acc_rows,
        steps_per_core=steps_per_core, rows_valid=rows, need_mask=need_mask)

    # VMEM budget: 2 pipeline buffers per input + resident partials + slack.
    in_bytes = block_rows * _LANE * (lf.dtype.itemsize + tf.dtype.itemsize)
    vmem_limit = int(min(max(2 * in_bytes + (2 << 20), 16 << 20), 48 << 20))

    partials = pl.pallas_call(
        kernel,
        out_shape=jax.ShapeDtypeStruct((num_cores * acc_rows, _LANE),
                                       jnp.float32),
        grid_spec=pltpu.PrefetchScalarGridSpec(
            num_scalar_prefetch=0,
            grid=(num_cores, steps_per_core),
            in_specs=[
                pl.BlockSpec((block_rows, _LANE), in_map),
                pl.BlockSpec((block_rows, _LANE), in_map),
            ],
            out_specs=pl.BlockSpec((acc_rows, _LANE), lambda c, k: (c, 0)),
        ),
        compiler_params=pltpu.CompilerParams(
            dimension_semantics=("parallel", "arbitrary"),
            vmem_limit_bytes=vmem_limit),
    )(lf, tf)

    # size_average=True: mean over the true element count.
    return (jnp.sum(partials) + tail_sum) / n


if __name__ == "__main__":
    key = jax.random.PRNGKey(0)
    k1, k2, k3, k4 = jax.random.split(key, 4)

    def _reference(logits, targets):
        p = jax.nn.sigmoid(logits.astype(jnp.float32))
        t = targets.astype(jnp.float32)
        return jnp.mean(-(t * jnp.maximum(jnp.log(p), -100.0)
                          + (1.0 - t) * jnp.maximum(jnp.log(1.0 - p), -100.0)))

    # Main case: NCHW, lane-aligned (as in the segmentation model).
    N, C, H, W = 2, 4, 16, 16
    logits = jax.random.normal(k1, (N, C, H, W), dtype=jnp.float32)
    targets = (jax.random.uniform(k2, (N, C, H, W)) > 0.5).astype(jnp.float32)
    loss = jax.block_until_ready(bce_loss_2d(logits, targets))
    ref = _reference(logits, targets)
    assert jnp.allclose(loss, ref, rtol=1e-5, atol=1e-6), (loss, ref)

    # Ragged case: exercises the gated partial-block mask and the <128-element
    # plain-JAX tail (no full-tensor pad).
    logits2 = jax.random.normal(k3, (1, 1, 33, 37), dtype=jnp.float32)
    targets2 = (jax.random.uniform(k4, (1, 1, 33, 37)) > 0.5).astype(jnp.float32)
    loss2 = jax.block_until_ready(bce_loss_2d(logits2, targets2))
    ref2 = _reference(logits2, targets2)
    assert jnp.allclose(loss2, ref2, rtol=1e-5, atol=1e-6), (loss2, ref2)

    print("KERNEL_OK")
</pallas_src>

<mosaic_0001>
module attributes {stable_mosaic.version = 11 : i64} {
  func.func @_bce_kernel(%arg0: i32, %arg1: i32, %arg2: memref<16x128xf32, #tpu.memory_space<vmem>>, %arg3: memref<16x128xf32, #tpu.memory_space<vmem>>, %arg4: memref<8x128xf32, #tpu.memory_space<vmem>>) attributes {dimension_semantics = [#tpu.dimension_semantics<parallel>, #tpu.dimension_semantics<arbitrary>], iteration_bounds = array<i64: 1, 1>, scalar_prefetch = 0 : i64, scratch_operands = 0 : i64, tpu.core_type = #tpu.core_type<tc>, window_params = [{transform_indices = @transform_0, window_bounds = array<i64: 16, 128>}, {transform_indices = @transform_1, window_bounds = array<i64: 16, 128>}, {transform_indices = @transform_2, window_bounds = array<i64: 8, 128>}]} {
    %c0_i32 = arith.constant 0 : i32
    %0 = arith.cmpi eq, %arg1, %c0_i32 : i32
    %1 = arith.extui %0 : i1 to i32
    %c0_i32_0 = arith.constant 0 : i32
    %2 = arith.cmpi ne, %1, %c0_i32_0 : i32
    scf.if %2 {
      %cst_18 = arith.constant 0.000000e+00 : f32
      %38 = vector.broadcast %cst_18 : f32 to vector<8x128xf32>
      %c0_19 = arith.constant 0 : index
      %c0_20 = arith.constant 0 : index
      %39 = vector.load %arg4[%c0_19, %c0_20] : memref<8x128xf32, #tpu.memory_space<vmem>>, vector<8x128xf32>
      tpu.vector_store %arg4[%c0_19, %c0_20], %38 {strides = array<i32>} : memref<8x128xf32, #tpu.memory_space<vmem>>, vector<8x128xf32>,
    } else {
    }
    %c0 = arith.constant 0 : index
    %c0_1 = arith.constant 0 : index
    %3 = vector.load %arg2[%c0, %c0_1] : memref<16x128xf32, #tpu.memory_space<vmem>>, vector<16x128xf32>
    %c0_2 = arith.constant 0 : index
    %c0_3 = arith.constant 0 : index
    %4 = vector.load %arg3[%c0_2, %c0_3] : memref<16x128xf32, #tpu.memory_space<vmem>>, vector<16x128xf32>
    %cst = arith.constant 0.000000e+00 : f32
    %5 = vector.broadcast %cst : f32 to vector<16x128xf32>
    %6 = arith.subf %5, %3 : vector<16x128xf32>
    %cst_4 = arith.constant 0.000000e+00 : f32
    %7 = vector.broadcast %cst_4 : f32 to vector<16x128xf32>
    %8 = arith.maximumf %6, %7 : vector<16x128xf32>
    %9 = math.absf %3 : vector<16x128xf32>
    %cst_5 = arith.constant 0.000000e+00 : f32
    %10 = vector.broadcast %cst_5 : f32 to vector<16x128xf32>
    %11 = arith.subf %10, %9 : vector<16x128xf32>
    %12 = math.exp %11 : vector<16x128xf32>
    %cst_6 = arith.constant 1.000000e+00 : f32
    %13 = vector.broadcast %cst_6 : f32 to vector<16x128xf32>
    %14 = arith.addf %13, %12 : vector<16x128xf32>
    %15 = math.log %14 : vector<16x128xf32>
    %16 = arith.addf %8, %15 : vector<16x128xf32>
    %cst_7 = arith.constant 0.000000e+00 : f32
    %17 = vector.broadcast %cst_7 : f32 to vector<16x128xf32>
    %18 = arith.subf %17, %16 : vector<16x128xf32>
    %cst_8 = arith.constant -1.000000e+02 : f32
    %19 = vector.broadcast %cst_8 : f32 to vector<16x128xf32>
    %20 = arith.maximumf %18, %19 : vector<16x128xf32>
    %cst_9 = arith.constant 0.000000e+00 : f32
    %21 = vector.broadcast %cst_9 : f32 to vector<16x128xf32>
    %22 = arith.subf %21, %3 : vector<16x128xf32>
    %23 = arith.subf %22, %16 : vector<16x128xf32>
    %cst_10 = arith.constant -1.000000e+02 : f32
    %24 = vector.broadcast %cst_10 : f32 to vector<16x128xf32>
    %25 = arith.maximumf %23, %24 : vector<16x128xf32>
    %26 = arith.mulf %4, %20 : vector<16x128xf32>
    %cst_11 = arith.constant 1.000000e+00 : f32
    %27 = vector.broadcast %cst_11 : f32 to vector<16x128xf32>
    %28 = arith.subf %27, %4 : vector<16x128xf32>
    %29 = arith.mulf %28, %25 : vector<16x128xf32>
    %30 = arith.addf %26, %29 : vector<16x128xf32>
    %cst_12 = arith.constant 0.000000e+00 : f32
    %31 = vector.broadcast %cst_12 : f32 to vector<16x128xf32>
    %32 = arith.subf %31, %30 : vector<16x128xf32>
    %c0_13 = arith.constant 0 : index
    %c0_14 = arith.constant 0 : index
    %33 = vector.load %arg4[%c0_13, %c0_14] : memref<8x128xf32, #tpu.memory_space<vmem>>, vector<8x128xf32>
    %34 = vector.shape_cast %32 : vector<16x128xf32> to vector<2x8x128xf32>
    %cst_15 = arith.constant dense<0.000000e+00> : vector<8x128xf32>
    %35 = vector.multi_reduction <add>, %34, %cst_15 [0] : vector<2x8x128xf32> to vector<8x128xf32>
    %36 = arith.addf %33, %35 : vector<8x128xf32>
    %c0_16 = arith.constant 0 : index
    %c0_17 = arith.constant 0 : index
    %37 = vector.load %arg4[%c0_16, %c0_17] : memref<8x128xf32, #tpu.memory_space<vmem>>, vector<8x128xf32>
    tpu.vector_store %arg4[%c0_16, %c0_17], %36 {strides = array<i32>} : memref<8x128xf32, #tpu.memory_space<vmem>>, vector<8x128xf32>,
    return
  }
  func.func @transform_0(%arg0: i32, %arg1: i32) -> (i32, i32) {
    %c1_i32 = arith.constant 1 : i32
    %0 = arith.muli %arg0, %c1_i32 : i32
    %1 = arith.addi %0, %arg1 : i32
    %c0_i32 = arith.constant 0 : i32
    %c0_i32_0 = arith.constant 0 : i32
    return %1, %c0_i32 : i32, i32
  }
  func.func @transform_1(%arg0: i32, %arg1: i32) -> (i32, i32) {
    %c1_i32 = arith.constant 1 : i32
    %0 = arith.muli %arg0, %c1_i32 : i32
    %1 = arith.addi %0, %arg1 : i32
    %c0_i32 = arith.constant 0 : i32
    %c0_i32_0 = arith.constant 0 : i32
    return %1, %c0_i32 : i32, i32
  }
  func.func @transform_2(%arg0: i32, %arg1: i32) -> (i32, i32) {
    %c0_i32 = arith.constant 0 : i32
    %c0_i32_0 = arith.constant 0 : i32
    return %arg0, %c0_i32 : i32, i32
  }
}

</mosaic_0001>

<bundles_post_ra>
// kernel: tpu_custom_call.1
= control target key start
LH: loop header
LB: loop body
LE: loop exit
PB: predicated region body
PF: predicated region fallthrough
CT: control target
= control target key end

     0   :  { %7 = vsyncpa [#allocation3], 0  ;;  %s246_s0 = inlined_call_operand.hbm [shape: f32[16,128], index: 0, kind: input, shape index: {}]   ;;  %s247_s1 = inlined_call_operand.hbm [shape: f32[16,128], index: 1, kind: input, shape index: {}]   ;;  %s248_s2 = inlined_call_operand.hbm [shape: f32[8,128], index: 2, kind: output, shape index: {}]  }
   0x1   :  { %8 = vsyncpa [#allocation6], 0 }
   0x2   :  { %9 = vsyncpa [#allocation4], 0  ;;  %s18_s11 = sshll.u32 %s246_s0, 4  ;;  %s217_s12 = smov [#allocation2]   ;;  %s19_s11 = int_to_ptr.hbm [resolvable:$true] %s18_s11 }
   0x3   :  { %s20_s13 = sshll.u32 %s217_s12, 4  ;;  %s35_s16 = sshll.u32 %s247_s1, 4  ;;  %s21_s13 = int_to_ptr.vmem [resolvable:$true] %s20_s13  ;;  %s36_s16 = int_to_ptr.hbm [resolvable:$true] %s35_s16 }
   0x4   :  { %s218_s17 = smov 128   ;;  %s219_s18 = smov 8  }
   0x5   :  { %26 = dma.hbm_to_vmem [thread:$0]  %s19_s11, 256, %s21_s13, [#allocation3], %s218_s17, %s218_s17, %s219_s18  }
   0x6   :  { %s220_s19 = smov [#allocation5]  }
   0x7   :  { %s37_s20 = sshll.u32 %s220_s19, 4  ;;  %s38_s20 = int_to_ptr.vmem [resolvable:$true] %s37_s20 }
   0x8   :  { %43 = dma.hbm_to_vmem [thread:$0]  %s36_s16, 256, %s38_s20, [#allocation6], %s218_s17, %s218_s17, %s219_s18  }
   0x9   :  { %211 = dma.done.wait [#allocation3], 256  }
   0xa   :  { %212 = vsyncadd [#allocation3], 4294967040 }
   0xb   :  { %213 = dma.done.wait [#allocation6], 256  }
   0xc   :  { %214 = vsyncadd [#allocation6], 4294967040  ;;  %v61_v0 = vld [vmem:[#allocation2] sm:$0xff]  ;;  %v62_v1 = vld [vmem:[#allocation2 + $0x8] sm:$0xff]  ;;  %s221_s0 = smov [#allocation7]   ;;  %s114_s23 = sshll.u32 %s248_s2, 4  ;;  %s115_s23 = int_to_ptr.hbm [resolvable:$true] %s114_s23 }
   0xd   :  { %v69_v2 = vand.u32 2147483647, %v61_v0  ;;  %v70_v3 = vand.u32 2147483647, %v62_v1  ;;  %v65_v12 = vsub.f32 0.0, %v61_v0  ;;  %v66_v13 = vsub.f32 0.0, %v62_v1 }
   0xe   :  { %v63_v19 = vld [vmem:[#allocation5] sm:$0xff]  ;;  %v64_v21 = vld [vmem:[#allocation5 + $0x8] sm:$0xff]  ;;  %s112_s1 = sshll.u32 %s221_s0, 4  ;;  %s113_s1 = int_to_ptr.vmem [resolvable:$true] %s112_s1 }
   0xf   :  { %v71_v4 = vsub.f32 0.0, %v69_v2  ;;  %v72_v5 = vsub.f32 0.0, %v70_v3  ;;  %v67_v14 = vmax.f32 %v65_v12, 0.0  ;;  %v68_v16 = vmax.f32 %v66_v13, 0.0 }
  0x10   :  { %v95_v26 = vsub.f32 1.0, %v63_v19  ;;  %v96_v29 = vsub.f32 1.0, %v64_v21 }
  0x11   :  { %v73_v6 = vmul.f32 1.442695, %v71_v4  ;;  %v75_v7 = vmul.f32 1.442695, %v72_v5 }
  0x13   :  { %131 = vpow2.f32 %v73_v6 }
  0x14   :  { %133 = vpow2.f32 %v75_v7 }
  0x19   :  { %v132_v8 = vpop.eup %131 }
  0x1a   :  { %v134_v9 = vpop.eup %133  ;;  %v77_v10 = vadd.f32 1.0, %v132_v8 }
  0x1b   :  { %v78_v11 = vadd.f32 1.0, %v134_v9 }
  0x1c   :  { %135 = vlog2.f32 %v77_v10 }
  0x1d   :  { %137 = vlog2.f32 %v78_v11 }
  0x22   :  { %v136_v15 = vpop.eup %135 }
  0x23   :  { %v138_v17 = vpop.eup %137  ;;  %v80_v18 = vmul.f32 0.6931472, %v136_v15 }
  0x24   :  { %v82_v20 = vmul.f32 0.6931472, %v138_v17 }
  0x25   :  { %v83_v22 = vadd.f32 %v80_v18, %v67_v14 }
  0x26   :  { %v84_v23 = vadd.f32 %v82_v20, %v68_v16 }
  0x27   :  { %v85_v24 = vsub.f32 0.0, %v83_v22  ;;  %v89_v25 = vsub.f32 %v65_v12, %v83_v22 }
  0x28   :  { %v86_v27 = vsub.f32 0.0, %v84_v23  ;;  %v90_v28 = vsub.f32 %v66_v13, %v84_v23 }
  0x29   :  { %v87_v30 = vmax.f32 %v85_v24, -100.0  ;;  %v91_v31 = vmax.f32 %v89_v25, -100.0 }
  0x2a   :  { %v88_v32 = vmax.f32 %v86_v27, -100.0  ;;  %v92_v33 = vmax.f32 %v90_v28, -100.0 }
  0x2b   :  { %v93_v34 = vmul.f32 %v87_v30, %v63_v19  ;;  %v97_v35 = vmul.f32 %v95_v26, %v91_v31 }
  0x2c   :  { %v94_v36 = vmul.f32 %v88_v32, %v64_v21  ;;  %v98_v37 = vmul.f32 %v96_v29, %v92_v33 }
  0x2d   :  { %v99_v38 = vadd.f32 %v97_v35, %v93_v34 }
  0x2e   :  { %v100_v39 = vadd.f32 %v98_v37, %v94_v36 }
  0x2f   :  { %v101_v40 = vsub.f32 0.0, %v99_v38 }
  0x30   :  { %v102_v41 = vsub.f32 0.0, %v100_v39 }
  0x32   :  { %v104_v42 = vadd.f32 %v102_v41, %v101_v40 }
  0x34   :  { %106 = vst [vmem:[#allocation7] sm:$0xff] %v104_v42 }
  0x35   :  { %117 = dma.vmem_to_hbm [thread:$0]  %s113_s1, 128, %s115_s23, [#allocation4]  }
  0x36   :  { %215 = dma.done.wait [#allocation4], 128  }
  0x37   :  { %216 = vsyncadd [#allocation4], 4294967168 }
  0x38   :  { %122 = vsyncpa [#allocation3], 1 }
  0x39   :  { %123 = vsyncpa [#allocation6], 1 }
  0x3a   :  { %124 = vsyncpa [#allocation4], 1 }

</bundles_post_ra>
